<compile_context>
chip_gen: v7x
topology: tpu7x:2x2x1
jax: 0.10.0
libtpu: 0.0.40
codegen_flags: <defaults>
</compile_context>

<pallas_src>
import functools

import jax
import jax.numpy as jnp
from jax.experimental import pallas as pl
from jax.experimental.pallas import tpu as pltpu

LANE = 128  # TPU lane width — final-layer weights padded to this many columns (MXU only).


def _round_up(x, m):
    return ((x + m - 1) // m) * m


def _layer(h, w_ref, b_ref):
    """Linear (+ folded BN) + ReLU. bf16 MXU operands, f32 accumulate / elementwise."""
    z = jnp.dot(h.astype(jnp.bfloat16), w_ref[...],
                preferred_element_type=jnp.float32)
    return jnp.maximum(z + b_ref[...], 0.0)


def ffn_kernel(x_ref, w1, b1, w2, b2, w3, b3, w4, b4, w5, b5, o_ref, *, out_cols):
    # First layer reads x directly (f32 or bf16) — cast happens inside _layer's dot.
    h = _layer(x_ref[...], w1, b1)
    h = _layer(h, w2, b2)
    h = _layer(h, w3, b3)
    h = _layer(h, w4, b4)
    out = jnp.dot(h.astype(jnp.bfloat16), w5[...],
                  preferred_element_type=jnp.float32) + b5[...]
    # w5/b5 are lane-padded to 128 for the MXU; only write the real output columns.
    o_ref[...] = out[:, :out_cols].astype(o_ref.dtype)


def custom_ffn_v3(x, kernel_params, output_dim, *, tm=512, out_dtype=jnp.float32):
    """x: (N, input_dim) f32 or bf16.  kernel_params: [w1,b1,...,w5,b5] with BN folded in,
    weights bf16 (in_dim, out_dim), biases f32 (1, out_dim), final layer padded to LANE
    columns for the MXU only.  Returns (N, output_dim) in out_dtype.

    tm is the batch tile: 512 keeps the HBM pipeline near roofline at large N (per-step
    overhead ~0.35 us); it is clamped to round_up(N, 8) for small batches so tiny inputs
    are not padded up.  VMEM footprint at tm=512 is well under every generation's scoped
    default, so no vmem_limit_bytes override is needed.  tm has no relation to MXU width
    (the dot's K/N are the feature dims); do not pad hidden_dim chasing MXU utilization —
    the kernel is memory-bound."""
    n, input_dim = x.shape

    tm_eff = min(tm, _round_up(n, 8))
    grid = (pl.cdiv(n, tm_eff),)  # edge tile (if any) is clipped by Pallas; OOB output
                                  # rows are dropped, so no wrapper pad/slice is needed.

    in_specs = [pl.BlockSpec((tm_eff, input_dim), lambda i: (i, 0))]
    for p in kernel_params:
        # Full-array blocks with a constant index_map -> weights stay VMEM-resident.
        in_specs.append(pl.BlockSpec(p.shape, lambda i: (0, 0)))

    out = pl.pallas_call(
        functools.partial(ffn_kernel, out_cols=output_dim),
        out_shape=jax.ShapeDtypeStruct((n, output_dim), out_dtype),
        grid=grid,
        in_specs=in_specs,
        out_specs=pl.BlockSpec((tm_eff, output_dim), lambda i: (i, 0)),
        compiler_params=pltpu.CompilerParams(
            dimension_semantics=("parallel",)),
    )(x, *kernel_params)
    return out


def init_module_params(key, input_dim, hidden_dim, output_dim):
    """Deterministic synthetic parameters: PyTorch-style uniform init for fc1..fc5 and
    (slightly randomized) BatchNorm running stats / affine for bn1..bn4."""
    dims = [input_dim, hidden_dim, hidden_dim, hidden_dim, hidden_dim, output_dim]
    layers = []
    for i in range(5):
        fan_in, fan_out = dims[i], dims[i + 1]
        key, kw, kb, km, kv, kg, ke = jax.random.split(key, 7)
        bound = 1.0 / (fan_in ** 0.5)
        w_t = jax.random.uniform(kw, (fan_in, fan_out), jnp.float32, -bound, bound)
        b = jax.random.uniform(kb, (1, fan_out), jnp.float32, -bound, bound)
        layer = {"w": w_t, "b": b}
        if i < 4:  # BN follows fc1..fc4 only
            layer["gamma"] = 1.0 + 0.1 * jax.random.uniform(kg, (1, fan_out), jnp.float32)
            layer["beta"] = 0.1 * jax.random.normal(ke, (1, fan_out), jnp.float32)
            layer["mean"] = 0.1 * jax.random.normal(km, (1, fan_out), jnp.float32)
            layer["var"] = 1.0 + 0.1 * jax.random.uniform(kv, (1, fan_out), jnp.float32)
        layers.append(layer)
    return layers


def fold_params(layers, eps=1e-5, lane_pad=LANE):
    """Fold BN (inference) into the linear weights/bias, pad the final layer to
    lane_pad output columns (for the MXU dot only; output writeback is unpadded),
    and cast weights to bf16."""
    params = []
    for i, layer in enumerate(layers):
        w, b = layer["w"], layer["b"]
        if "gamma" in layer:
            scale = layer["gamma"] / jnp.sqrt(layer["var"] + eps)   # (1, out)
            w = w * scale
            b = (b - layer["mean"]) * scale + layer["beta"]
        if i == len(layers) - 1:
            pad = lane_pad - w.shape[1]
            if pad > 0:
                w = jnp.pad(w, ((0, 0), (0, pad)))
                b = jnp.pad(b, ((0, 0), (0, pad)))
        params.extend([w.astype(jnp.bfloat16), b.astype(jnp.float32)])
    return params


def reference_forward_f32(x, layers, eps=1e-5):
    """Plain-JAX f32 reference matching the PyTorch module (eval mode)."""
    h = x.astype(jnp.float32)
    for layer in layers:
        h = h @ layer["w"] + layer["b"]
        if "gamma" in layer:
            h = (h - layer["mean"]) / jnp.sqrt(layer["var"] + eps)
            h = h * layer["gamma"] + layer["beta"]
            h = jnp.maximum(h, 0.0)  # ReLU; Dropout(eval) == identity
    return h


def reference_forward_bf16(x, kernel_params, output_dim):
    """Plain-JAX reference using the same folded bf16 params / casts as the kernel."""
    h = x
    ws, bs = kernel_params[0::2], kernel_params[1::2]
    for i in range(len(ws)):
        z = jnp.dot(h.astype(jnp.bfloat16), ws[i],
                    preferred_element_type=jnp.float32) + bs[i]
        h = jnp.maximum(z, 0.0) if i < len(ws) - 1 else z
    return h[:, :output_dim]


if __name__ == "__main__":
    # Small shapes consistent with the module: batch=8, input_dim=32, hidden_dim=32,
    # output_dim=16.
    batch, input_dim, hidden_dim, output_dim = 8, 32, 32, 16

    key = jax.random.PRNGKey(0)
    key, kx = jax.random.split(key)
    x = jax.random.normal(kx, (batch, input_dim), jnp.float32)

    layers = init_module_params(key, input_dim, hidden_dim, output_dim)
    kernel_params = fold_params(layers)

    out = custom_ffn_v3(x, kernel_params, output_dim)
    out = jax.block_until_ready(out)

    assert out.shape == (batch, output_dim)
    assert out.dtype == jnp.float32

    # Tight check against a reference that uses identical folded bf16 params.
    ref_bf16 = reference_forward_bf16(x, kernel_params, output_dim)
    assert jnp.allclose(out, ref_bf16, atol=1e-2, rtol=1e-2), "mismatch vs bf16 ref"

    # Looser semantic check against the full-precision PyTorch-equivalent forward.
    ref_f32 = reference_forward_f32(x, layers)
    assert jnp.allclose(out, ref_f32, atol=7e-2, rtol=7e-2), "mismatch vs f32 module ref"

    print("KERNEL_OK")
</pallas_src>

<mosaic_0001>
module attributes {stable_mosaic.version = 11 : i64} {
  func.func @ffn_kernel(%arg0: i32, %arg1: memref<8x32xf32, #tpu.memory_space<vmem>>, %arg2: memref<32x32xbf16, #tpu.memory_space<vmem>>, %arg3: memref<1x32xf32, #tpu.memory_space<vmem>>, %arg4: memref<32x32xbf16, #tpu.memory_space<vmem>>, %arg5: memref<1x32xf32, #tpu.memory_space<vmem>>, %arg6: memref<32x32xbf16, #tpu.memory_space<vmem>>, %arg7: memref<1x32xf32, #tpu.memory_space<vmem>>, %arg8: memref<32x32xbf16, #tpu.memory_space<vmem>>, %arg9: memref<1x32xf32, #tpu.memory_space<vmem>>, %arg10: memref<32x128xbf16, #tpu.memory_space<vmem>>, %arg11: memref<1x128xf32, #tpu.memory_space<vmem>>, %arg12: memref<8x16xf32, #tpu.memory_space<vmem>>) attributes {dimension_semantics = [#tpu.dimension_semantics<parallel>], iteration_bounds = array<i64: 1>, scalar_prefetch = 0 : i64, scratch_operands = 0 : i64, tpu.core_type = #tpu.core_type<tc>, window_params = [{transform_indices = @transform_0, window_bounds = array<i64: 8, 32>}, {pipeline_mode = #tpu.pipeline_mode<synchronous>, transform_indices = @transform_1, window_bounds = array<i64: 32, 32>}, {pipeline_mode = #tpu.pipeline_mode<synchronous>, transform_indices = @transform_2, window_bounds = array<i64: 1, 32>}, {pipeline_mode = #tpu.pipeline_mode<synchronous>, transform_indices = @transform_3, window_bounds = array<i64: 32, 32>}, {pipeline_mode = #tpu.pipeline_mode<synchronous>, transform_indices = @transform_4, window_bounds = array<i64: 1, 32>}, {pipeline_mode = #tpu.pipeline_mode<synchronous>, transform_indices = @transform_5, window_bounds = array<i64: 32, 32>}, {pipeline_mode = #tpu.pipeline_mode<synchronous>, transform_indices = @transform_6, window_bounds = array<i64: 1, 32>}, {pipeline_mode = #tpu.pipeline_mode<synchronous>, transform_indices = @transform_7, window_bounds = array<i64: 32, 32>}, {pipeline_mode = #tpu.pipeline_mode<synchronous>, transform_indices = @transform_8, window_bounds = array<i64: 1, 32>}, {pipeline_mode = #tpu.pipeline_mode<synchronous>, transform_indices = @transform_9, window_bounds = array<i64: 32, 128>}, {pipeline_mode = #tpu.pipeline_mode<synchronous>, transform_indices = @transform_10, window_bounds = array<i64: 1, 128>}, {transform_indices = @transform_11, window_bounds = array<i64: 8, 16>}]} {
    %c0 = arith.constant 0 : index
    %c0_0 = arith.constant 0 : index
    %0 = vector.load %arg1[%c0, %c0_0] : memref<8x32xf32, #tpu.memory_space<vmem>>, vector<8x32xf32>
    %1 = arith.truncf %0 : vector<8x32xf32> to vector<8x32xbf16>
    %c0_1 = arith.constant 0 : index
    %c0_2 = arith.constant 0 : index
    %2 = vector.load %arg2[%c0_1, %c0_2] : memref<32x32xbf16, #tpu.memory_space<vmem>>, vector<32x32xbf16>
    %cst = arith.constant dense<0.000000e+00> : vector<8x32xf32>
    %3 = tpu.matmul %1, %2, %cst {dimension_numbers = #tpu.dot_dimension_numbers<[1], [0], [0], [1], [0, 0, 1, 1], [], []>} : vector<8x32xbf16>, vector<32x32xbf16>, vector<8x32xf32> -> vector<8x32xf32>
    %c0_3 = arith.constant 0 : index
    %c0_4 = arith.constant 0 : index
    %4 = vector.load %arg3[%c0_3, %c0_4] : memref<1x32xf32, #tpu.memory_space<vmem>>, vector<1x32xf32>
    %5 = vector.broadcast %4 : vector<1x32xf32> to vector<8x32xf32>
    %6 = arith.addf %3, %5 : vector<8x32xf32>
    %cst_5 = arith.constant 0.000000e+00 : f32
    %7 = vector.broadcast %cst_5 : f32 to vector<8x32xf32>
    %8 = arith.maximumf %6, %7 : vector<8x32xf32>
    %9 = arith.truncf %8 : vector<8x32xf32> to vector<8x32xbf16>
    %c0_6 = arith.constant 0 : index
    %c0_7 = arith.constant 0 : index
    %10 = vector.load %arg4[%c0_6, %c0_7] : memref<32x32xbf16, #tpu.memory_space<vmem>>, vector<32x32xbf16>
    %cst_8 = arith.constant dense<0.000000e+00> : vector<8x32xf32>
    %11 = tpu.matmul %9, %10, %cst_8 {dimension_numbers = #tpu.dot_dimension_numbers<[1], [0], [0], [1], [0, 0, 1, 1], [], []>} : vector<8x32xbf16>, vector<32x32xbf16>, vector<8x32xf32> -> vector<8x32xf32>
    %c0_9 = arith.constant 0 : index
    %c0_10 = arith.constant 0 : index
    %12 = vector.load %arg5[%c0_9, %c0_10] : memref<1x32xf32, #tpu.memory_space<vmem>>, vector<1x32xf32>
    %13 = vector.broadcast %12 : vector<1x32xf32> to vector<8x32xf32>
    %14 = arith.addf %11, %13 : vector<8x32xf32>
    %cst_11 = arith.constant 0.000000e+00 : f32
    %15 = vector.broadcast %cst_11 : f32 to vector<8x32xf32>
    %16 = arith.maximumf %14, %15 : vector<8x32xf32>
    %17 = arith.truncf %16 : vector<8x32xf32> to vector<8x32xbf16>
    %c0_12 = arith.constant 0 : index
    %c0_13 = arith.constant 0 : index
    %18 = vector.load %arg6[%c0_12, %c0_13] : memref<32x32xbf16, #tpu.memory_space<vmem>>, vector<32x32xbf16>
    %cst_14 = arith.constant dense<0.000000e+00> : vector<8x32xf32>
    %19 = tpu.matmul %17, %18, %cst_14 {dimension_numbers = #tpu.dot_dimension_numbers<[1], [0], [0], [1], [0, 0, 1, 1], [], []>} : vector<8x32xbf16>, vector<32x32xbf16>, vector<8x32xf32> -> vector<8x32xf32>
    %c0_15 = arith.constant 0 : index
    %c0_16 = arith.constant 0 : index
    %20 = vector.load %arg7[%c0_15, %c0_16] : memref<1x32xf32, #tpu.memory_space<vmem>>, vector<1x32xf32>
    %21 = vector.broadcast %20 : vector<1x32xf32> to vector<8x32xf32>
    %22 = arith.addf %19, %21 : vector<8x32xf32>
    %cst_17 = arith.constant 0.000000e+00 : f32
    %23 = vector.broadcast %cst_17 : f32 to vector<8x32xf32>
    %24 = arith.maximumf %22, %23 : vector<8x32xf32>
    %25 = arith.truncf %24 : vector<8x32xf32> to vector<8x32xbf16>
    %c0_18 = arith.constant 0 : index
    %c0_19 = arith.constant 0 : index
    %26 = vector.load %arg8[%c0_18, %c0_19] : memref<32x32xbf16, #tpu.memory_space<vmem>>, vector<32x32xbf16>
    %cst_20 = arith.constant dense<0.000000e+00> : vector<8x32xf32>
    %27 = tpu.matmul %25, %26, %cst_20 {dimension_numbers = #tpu.dot_dimension_numbers<[1], [0], [0], [1], [0, 0, 1, 1], [], []>} : vector<8x32xbf16>, vector<32x32xbf16>, vector<8x32xf32> -> vector<8x32xf32>
    %c0_21 = arith.constant 0 : index
    %c0_22 = arith.constant 0 : index
    %28 = vector.load %arg9[%c0_21, %c0_22] : memref<1x32xf32, #tpu.memory_space<vmem>>, vector<1x32xf32>
    %29 = vector.broadcast %28 : vector<1x32xf32> to vector<8x32xf32>
    %30 = arith.addf %27, %29 : vector<8x32xf32>
    %cst_23 = arith.constant 0.000000e+00 : f32
    %31 = vector.broadcast %cst_23 : f32 to vector<8x32xf32>
    %32 = arith.maximumf %30, %31 : vector<8x32xf32>
    %33 = arith.truncf %32 : vector<8x32xf32> to vector<8x32xbf16>
    %c0_24 = arith.constant 0 : index
    %c0_25 = arith.constant 0 : index
    %34 = vector.load %arg10[%c0_24, %c0_25] : memref<32x128xbf16, #tpu.memory_space<vmem>>, vector<32x128xbf16>
    %cst_26 = arith.constant dense<0.000000e+00> : vector<8x128xf32>
    %35 = tpu.matmul %33, %34, %cst_26 {dimension_numbers = #tpu.dot_dimension_numbers<[1], [0], [0], [1], [0, 0, 1, 1], [], []>} : vector<8x32xbf16>, vector<32x128xbf16>, vector<8x128xf32> -> vector<8x128xf32>
    %c0_27 = arith.constant 0 : index
    %c0_28 = arith.constant 0 : index
    %36 = vector.load %arg11[%c0_27, %c0_28] : memref<1x128xf32, #tpu.memory_space<vmem>>, vector<1x128xf32>
    %37 = vector.broadcast %36 : vector<1x128xf32> to vector<8x128xf32>
    %38 = arith.addf %35, %37 : vector<8x128xf32>
    %39 = vector.extract_strided_slice %38 {offsets = [0, 0], sizes = [8, 16], strides = [1, 1]} : vector<8x128xf32> to vector<8x16xf32>
    %c0_29 = arith.constant 0 : index
    %c0_30 = arith.constant 0 : index
    %40 = vector.load %arg12[%c0_29, %c0_30] : memref<8x16xf32, #tpu.memory_space<vmem>>, vector<8x16xf32>
    tpu.vector_store %arg12[%c0_29, %c0_30], %39 {strides = array<i32>} : memref<8x16xf32, #tpu.memory_space<vmem>>, vector<8x16xf32>,
    return
  }
  func.func @transform_0(%arg0: i32) -> (i32, i32) {
    %c0_i32 = arith.constant 0 : i32
    %c0_i32_0 = arith.constant 0 : i32
    return %arg0, %c0_i32 : i32, i32
  }
  func.func @transform_1(%arg0: i32) -> (i32, i32) {
    %c0_i32 = arith.constant 0 : i32
    %c0_i32_0 = arith.constant 0 : i32
    %c0_i32_1 = arith.constant 0 : i32
    return %c0_i32, %c0_i32_0 : i32, i32
  }
  func.func @transform_2(%arg0: i32) -> (i32, i32) {
    %c0_i32 = arith.constant 0 : i32
    %c0_i32_0 = arith.constant 0 : i32
    %c0_i32_1 = arith.constant 0 : i32
    return %c0_i32, %c0_i32_0 : i32, i32
  }
  func.func @transform_3(%arg0: i32) -> (i32, i32) {
    %c0_i32 = arith.constant 0 : i32
    %c0_i32_0 = arith.constant 0 : i32
    %c0_i32_1 = arith.constant 0 : i32
    return %c0_i32, %c0_i32_0 : i32, i32
  }
  func.func @transform_4(%arg0: i32) -> (i32, i32) {
    %c0_i32 = arith.constant 0 : i32
    %c0_i32_0 = arith.constant 0 : i32
    %c0_i32_1 = arith.constant 0 : i32
    return %c0_i32, %c0_i32_0 : i32, i32
  }
  func.func @transform_5(%arg0: i32) -> (i32, i32) {
    %c0_i32 = arith.constant 0 : i32
    %c0_i32_0 = arith.constant 0 : i32
    %c0_i32_1 = arith.constant 0 : i32
    return %c0_i32, %c0_i32_0 : i32, i32
  }
  func.func @transform_6(%arg0: i32) -> (i32, i32) {
    %c0_i32 = arith.constant 0 : i32
    %c0_i32_0 = arith.constant 0 : i32
    %c0_i32_1 = arith.constant 0 : i32
    return %c0_i32, %c0_i32_0 : i32, i32
  }
  func.func @transform_7(%arg0: i32) -> (i32, i32) {
    %c0_i32 = arith.constant 0 : i32
    %c0_i32_0 = arith.constant 0 : i32
    %c0_i32_1 = arith.constant 0 : i32
    return %c0_i32, %c0_i32_0 : i32, i32
  }
  func.func @transform_8(%arg0: i32) -> (i32, i32) {
    %c0_i32 = arith.constant 0 : i32
    %c0_i32_0 = arith.constant 0 : i32
    %c0_i32_1 = arith.constant 0 : i32
    return %c0_i32, %c0_i32_0 : i32, i32
  }
  func.func @transform_9(%arg0: i32) -> (i32, i32) {
    %c0_i32 = arith.constant 0 : i32
    %c0_i32_0 = arith.constant 0 : i32
    %c0_i32_1 = arith.constant 0 : i32
    return %c0_i32, %c0_i32_0 : i32, i32
  }
  func.func @transform_10(%arg0: i32) -> (i32, i32) {
    %c0_i32 = arith.constant 0 : i32
    %c0_i32_0 = arith.constant 0 : i32
    %c0_i32_1 = arith.constant 0 : i32
    return %c0_i32, %c0_i32_0 : i32, i32
  }
  func.func @transform_11(%arg0: i32) -> (i32, i32) {
    %c0_i32 = arith.constant 0 : i32
    %c0_i32_0 = arith.constant 0 : i32
    return %arg0, %c0_i32 : i32, i32
  }
}

</mosaic_0001>

<bundles_post_ra>
// kernel: tpu_custom_call.1
= control target key start
LH: loop header
LB: loop body
LE: loop exit
PB: predicated region body
PF: predicated region fallthrough
CT: control target
= control target key end

     0   :  { %16 = vsyncpa [#allocation3], 0  ;;  %s932_s0 = inlined_call_operand.hbm [shape: f32[8,32], index: 0, kind: input, shape index: {}]   ;;  %s933_s1 = inlined_call_operand.hbm [shape: bf16[32,32], index: 1, kind: input, shape index: {}]   ;;  %s934_s2 = inlined_call_operand.vmem [shape: f32[1,32], index: 2, kind: input, shape index: {}]   ;;  %s935_s3 = inlined_call_operand.hbm [shape: bf16[32,32], index: 3, kind: input, shape index: {}]   ;;  %s936_s4 = inlined_call_operand.vmem [shape: f32[1,32], index: 4, kind: input, shape index: {}]   ;;  %s937_s5 = inlined_call_operand.vmem [shape: bf16[32,32], index: 5, kind: input, shape index: {}]   ;;  %s938_s6 = inlined_call_operand.hbm [shape: f32[1,32], index: 6, kind: input, shape index: {}]   ;;  %s939_s7 = inlined_call_operand.hbm [shape: bf16[32,32], index: 7, kind: input, shape index: {}]   ;;  %s940_s8 = inlined_call_operand.hbm [shape: f32[1,32], index: 8, kind: input, shape index: {}]   ;;  %s941_s9 = inlined_call_operand.vmem [shape: bf16[32,128], index: 9, kind: input, shape index: {}]   ;;  %s942_s10 = inlined_call_operand.vmem [shape: f32[1,128], index: 10, kind: input, shape index: {}]   ;;  %s943_s11 = inlined_call_operand.hbm [shape: f32[8,16], index: 11, kind: output, shape index: {}]  }
   0x1   :  { %17 = vsyncpa [#allocation6], 0 }
   0x2   :  { %18 = vsyncpa [#allocation9], 0 }
   0x3   :  { %19 = vsyncpa [#allocation12], 0 }
   0x4   :  { %20 = vsyncpa [#allocation4], 0  ;;  %s737_s17 = smov [#allocation5]   ;;  %s573_s21 = scalar_lea.hbm %s933_s1, 256 }
   0x5   :  { %s36_s18 = sshll.u32 %s737_s17, 4  ;;  %p574_p0 = scmp.ne.s32.totalorder %s933_s1, %s573_s21  ;;  %s37_s18 = int_to_ptr.vmem [resolvable:$true] %s36_s18 }
   0x6   :  { %p577_p1 = scmp.lt.u32.totalorder %s573_s21, %s933_s1 }
   0x8   :  { %p579_p2 = pnand %p577_p1, %p574_p0 }
   0xa   :  { %582 = shalt.err (!%p579_p2)
}
   0xb   :  { %s583_s26 = scalar_lea.vmem %s37_s18, 256  ;;  %p588_p4 = scmp.lt.s32.totalorder %s37_s18, %s37_s18 }
   0xc   :  { %p584_p3 = scmp.ne.s32.totalorder %s37_s18, %s583_s26  ;;  %p589_p5 = scmp.lt.s32.totalorder %s583_s26, %s583_s26 }
   0xe   :  { %p590_p6 = por %p589_p5, %p588_p4 }
  0x10   :  { %p591_p7 = pnand %p590_p6, %p584_p3 }
  0x12   :  { %594 = shalt.err (!%p591_p7)
}
  0x13   :  { %s738_s27 = smov 64   ;;  %s739_s28 = smov 4  }
  0x14   :  { %42 = dma.hbm_to_vmem [thread:$0]  %s933_s1, 256, %s37_s18, [#allocation6], %s738_s27, %s738_s27, %s739_s28  }
  0x15   :  { %s740_s12 = smov [#allocation8]   ;;  %s741_s14 = smov [#allocation2]  }
  0x16   :  { %s67_s13 = sshll.u32 %s740_s12, 4  ;;  %s27_s15 = sshll.u32 %s741_s14, 4  ;;  %s68_s13 = int_to_ptr.vmem [resolvable:$true] %s67_s13  ;;  %s28_s15 = int_to_ptr.vmem [resolvable:$true] %s27_s15 }
  0x17   :  { %s595_s19 = scalar_lea.hbm %s938_s6, 16 }
  0x18   :  { %p596_p8 = scmp.ne.s32.totalorder %s938_s6, %s595_s19  ;;  %p599_p9 = scmp.lt.u32.totalorder %s595_s19, %s938_s6 }
  0x1a   :  { %p601_p10 = pnand %p599_p9, %p596_p8 }
  0x1c   :  { %604 = shalt.err (!%p601_p10)
}
  0x1d   :  { %s605_s1 = scalar_lea.vmem %s68_s13, 16  ;;  %s609_s18 = scalar_lea.vmem %s68_s13, 32 }
  0x1e   :  { %p606_p11 = scmp.ne.s32.totalorder %s68_s13, %s605_s1  ;;  %p610_p12 = scmp.lt.s32.totalorder %s68_s13, %s68_s13 }
  0x1f   :  { %p611_p13 = scmp.lt.s32.totalorder %s609_s18, %s605_s1 }
  0x21   :  { %p612_p0 = por %p611_p13, %p610_p12 }
  0x23   :  { %p613_p1 = pnand %p612_p0, %p606_p11 }
  0x25   :  { %616 = shalt.err (!%p613_p1)
}
  0x26   :  { %70 = dma.hbm_to_vmem [thread:$0]  %s938_s6, 16, %s68_s13, [#allocation9]  }
  0x27   :  { %s617_s30 = scalar_lea.hbm %s932_s0, 128 }
  0x28   :  { %p618_p2 = scmp.ne.s32.totalorder %s932_s0, %s617_s30  ;;  %p621_p3 = scmp.lt.u32.totalorder %s617_s30, %s932_s0 }
  0x2a   :  { %p623_p4 = pnand %p621_p3, %p618_p2 }
  0x2c   :  { %626 = shalt.err (!%p623_p4)
}
  0x2d   :  { %s627_s19 = scalar_lea.vmem %s28_s15, 128  ;;  %p632_p6 = scmp.lt.s32.totalorder %s28_s15, %s28_s15 }
  0x2e   :  { %p628_p5 = scmp.ne.s32.totalorder %s28_s15, %s627_s19  ;;  %p633_p7 = scmp.lt.s32.totalorder %s627_s19, %s627_s19 }
  0x30   :  { %p634_p8 = por %p633_p7, %p632_p6 }
  0x32   :  { %p635_p9 = pnand %p634_p8, %p628_p5 }
  0x34   :  { %638 = shalt.err (!%p635_p9)
}
  0x35   :  { %30 = dma.hbm_to_vmem [thread:$0]  %s932_s0, 128, %s28_s15, [#allocation3]  }
  0x36   :  { %s742_s20 = smov [#allocation7]   ;;  %s743_s22 = smov [#allocation10]  }
  0x37   :  { %s50_s21 = sshll.u32 %s742_s20, 4  ;;  %s76_s23 = sshll.u32 %s743_s22, 4  ;;  %s51_s21 = int_to_ptr.vmem [resolvable:$true] %s50_s21  ;;  %s77_s23 = int_to_ptr.vmem [resolvable:$true] %s76_s23 }
  0x38   :  { %s639_s24 = scalar_lea.hbm %s935_s3, 256 }
  0x39   :  { %p640_p10 = scmp.ne.s32.totalorder %s935_s3, %s639_s24  ;;  %p643_p11 = scmp.lt.u32.totalorder %s639_s24, %s935_s3 }
  0x3b   :  { %p645_p12 = pnand %p643_p11, %p640_p10 }
  0x3d   :  { %648 = shalt.err (!%p645_p12)
}
  0x3e   :  { %s649_s0 = scalar_lea.vmem %s51_s21, 256  ;;  %p654_p0 = scmp.lt.s32.totalorder %s51_s21, %s51_s21 }
  0x3f   :  { %p650_p13 = scmp.ne.s32.totalorder %s51_s21, %s649_s0  ;;  %p655_p1 = scmp.lt.s32.totalorder %s649_s0, %s649_s0 }
  0x41   :  { %p656_p2 = por %p655_p1, %p654_p0 }
  0x43   :  { %p657_p3 = pnand %p656_p2, %p650_p13 }
  0x45   :  { %660 = shalt.err (!%p657_p3)
}
  0x46   :  { %56 = dma.hbm_to_vmem [thread:$0]  %s935_s3, 256, %s51_s21, [#allocation6], %s738_s27, %s738_s27, %s739_s28  }
  0x47   :  { %s661_s17 = scalar_lea.hbm %s939_s7, 256 }
  0x48   :  { %p662_p4 = scmp.ne.s32.totalorder %s939_s7, %s661_s17  ;;  %p665_p5 = scmp.lt.u32.totalorder %s661_s17, %s939_s7 }
  0x4a   :  { %p667_p6 = pnand %p665_p5, %p662_p4 }
  0x4c   :  { %670 = shalt.err (!%p667_p6)
}
  0x4d   :  { %s671_s22 = scalar_lea.vmem %s77_s23, 256  ;;  %p676_p8 = scmp.lt.s32.totalorder %s77_s23, %s77_s23 }
  0x4e   :  { %p672_p7 = scmp.ne.s32.totalorder %s77_s23, %s671_s22  ;;  %p677_p9 = scmp.lt.s32.totalorder %s671_s22, %s671_s22 }
  0x50   :  { %p678_p10 = por %p677_p9, %p676_p8 }
  0x52   :  { %p679_p11 = pnand %p678_p10, %p672_p7 }
  0x54   :  { %682 = shalt.err (!%p679_p11)
}
  0x55   :  { %82 = dma.hbm_to_vmem [thread:$0]  %s939_s7, 256, %s77_s23, [#allocation9], %s738_s27, %s738_s27, %s739_s28  }
  0x56   :  { %s744_s1 = smov [#allocation11]   ;;  %s683_s26 = scalar_lea.hbm %s940_s8, 16 }
  0x57   :  { %s89_s18 = sshll.u32 %s744_s1, 4  ;;  %p684_p12 = scmp.ne.s32.totalorder %s940_s8, %s683_s26  ;;  %s90_s18 = int_to_ptr.vmem [resolvable:$true] %s89_s18 }
  0x58   :  { %p687_p13 = scmp.lt.u32.totalorder %s683_s26, %s940_s8 }
  0x5a   :  { %p689_p0 = pnand %p687_p13, %p684_p12 }
  0x5c   :  { %692 = shalt.err (!%p689_p0)
}
  0x5d   :  { %s693_s12 = scalar_lea.vmem %s90_s18, 16  ;;  %s697_s7 = scalar_lea.vmem %s90_s18, 32 }
  0x5e   :  { %p694_p1 = scmp.ne.s32.totalorder %s90_s18, %s693_s12  ;;  %p698_p2 = scmp.lt.s32.totalorder %s90_s18, %s90_s18 }
  0x5f   :  { %p699_p3 = scmp.lt.s32.totalorder %s697_s7, %s693_s12 }
  0x61   :  { %p700_p4 = por %p699_p3, %p698_p2 }
  0x63   :  { %p701_p5 = pnand %p700_p4, %p694_p1 }
  0x65   :  { %704 = shalt.err (!%p701_p5)
}
  0x66   :  { %92 = dma.hbm_to_vmem [thread:$0]  %s940_s8, 16, %s90_s18, [#allocation12]  }
  0x67   :  { %727 = dma.done.wait [#allocation3], 128  }
  0x68   :  { %728 = vsyncadd [#allocation3], 4294967168 }
  0x69   :  { %729 = dma.done.wait [#allocation6], 512  }
  0x6a   :  { %730 = vsyncadd [#allocation6], 4294966784 }
  0x6b   :  { %731 = dma.done.wait [#allocation9], 272  }
  0x6c   :  { %732 = vsyncadd [#allocation9], 4294967024 }
  0x6d   :  { %733 = dma.done.wait [#allocation12], 16  }
  0x6e   :  { %734 = vsyncadd [#allocation12], 4294967280  ;;  %v745_v0 = vmov 0.0   ;;  %vm746_vm0 = vmmov 0   ;;  %v563_v1 = vld [vmem:[#allocation5] sm:$0xff]   ;;  %v564_v2 = vld [vmem:[#allocation5 + $0x8] sm:$0xff]  }
  0x6f   :  { %512 = vmatprep.subr.bf16.mxu0 %v745_v0  ;;  %516 = vmatprep.mubr.msk.bf16.mxu0 %vm746_vm0, %v745_v0  ;;  %v116_v3 = vld [vmem:[#allocation2] sm:$0xff]  ;;  %vm141_vm1 = vcmask 261120   ;;  %v565_v5 = vld [vmem:[#allocation7] sm:$0xff]   ;;  %v568_v16 = vld [vmem:[%s937_s5 + $0x8] sm:$0xff]   ;;  %s747_s21 = smov [#allocation13]   ;;  %vm457_vm2 = vcmask 130048  }
  0x70   :  { %520 = vmatprep.subr.bf16.mxu1 %v745_v0  ;;  %524 = vmatprep.mubr.msk.bf16.mxu1 %vm746_vm0, %v745_v0  ;;  %v117_v4 = vpack.c.bf16 %v116_v3, %v116_v3  ;;  %v566_v6 = vld [vmem:[#allocation7 + $0x8] sm:$0xff]   ;;  %v569_v17 = vld [vmem:[#allocation10] sm:$0xff]   ;;  %v570_v26 = vld [vmem:[#allocation10 + $0x8] sm:$0xff]   ;;  %s465_s1 = sshll.u32 %s747_s21, 4  ;;  %s466_s1 = int_to_ptr.vmem [resolvable:$true] %s465_s1 }
  0x71   :  { %513 = vmatpush3.bf16.msra.mxu0 %v563_v1  ;;  %521 = vmatpush3.bf16.msra.mxu1 %v565_v5  ;;  %v567_v7 = vld [vmem:[%s937_s5] sm:$0xff]   ;;  %v485_v28 = vld [vmem:[#allocation8] ss:$0 sm:$0xff]  ;;  %v489_v37 = vld [vmem:[#allocation11] ss:$0 sm:$0xff]  ;;  %p710_p7 = scmp.lt.s32.totalorder %s466_s1, %s466_s1 }
  0x72   :  { %514 = vmatprep.subr.bf16.mxu0 %v745_v0  ;;  %522 = vmatprep.subr.bf16.mxu1 %v745_v0  ;;  %v477_v8 = vld [vmem:[%s934_s2] ss:$0 sm:$0xff]  ;;  %v572_v36 = vld [vmem:[%s941_s9 + $0x8] sm:$0xff]  }
  0x73   :  { %v481_v18 = vld [vmem:[%s936_s4] ss:$0 sm:$0xff] }
  0x74   :  { %v571_v27 = vld [vmem:[%s941_s9] sm:$0xff]   ;;  %s705_s9 = scalar_lea.vmem %s466_s1, 128 }
  0x75   :  { %515 = vmatpush3.bf16.msra.mxu0 %v564_v2  ;;  %523 = vmatpush3.bf16.msra.mxu1 %v566_v6  ;;  %v493_v45 = vld [vmem:[%s942_s10] ss:$0 sm:$0xff]  ;;  %p706_p6 = scmp.ne.s32.totalorder %s466_s1, %s705_s9  ;;  %p711_p8 = scmp.lt.s32.totalorder %s705_s9, %s705_s9 }
  0x76   :  { %528 = vmatprep.subr.bf16.mxu0 %v745_v0  ;;  %536 = vmatprep.subr.bf16.mxu1 %v745_v0 }
  0x77   :  { %p712_p9 = por %p711_p8, %p710_p7 }
  0x78   :  { %517 = vmatmul.mubr.msk.bf16.vlgmr.msra.gmra.mrb[0].mxu0 %vm141_vm1, %v117_v4 }
  0x79   :  { %532 = vmatprep.mubr.msk.bf16.mxu0 %vm746_vm0, %v745_v0  ;;  %529 = vmatpush3.bf16.msra.mxu0 %v567_v7  ;;  %p713_p10 = pnand %p712_p9, %p706_p6 }
  0x7a   :  { %530 = vmatprep.subr.bf16.mxu0 %v745_v0 }
  0x7d   :  { %531 = vmatpush3.bf16.msra.mxu0 %v568_v16 }
  0x7e   :  { %544 = vmatprep.subr.bf16.mxu0 %v745_v0 }
 0x14b   :  { %v179_v9 = vpop.f32.mrb[0].mxu0 }
 0x14c   :  { %v180_v10 = vadd.f32 %v477_v8, %v179_v9  ;;  %v518_v11 = vpop.f32.mrb[1].mxu0 }
 0x14d   :  { %v182_v12 = vpop.f32.mrb[2].mxu0 }
 0x14e   :  { %v185_v13 = vmax.f32 %v180_v10, 0.0  ;;  %v519_v14 = vpop.f32.mrb[3].mxu0 }
 0x150   :  { %v186_v15 = vpack.c.bf16 %v185_v13, %v185_v13 }
 0x152   :  { %525 = vmatmul.mubr.msk.bf16.vlgmr.msra.gmra.mrb[0].mxu1 %vm141_vm1, %v186_v15 }
 0x153   :  { %540 = vmatprep.mubr.msk.bf16.mxu1 %vm746_vm0, %v745_v0  ;;  %537 = vmatpush3.bf16.msra.mxu1 %v569_v17 }
 0x154   :  { %538 = vmatprep.subr.bf16.mxu1 %v745_v0 }
 0x157   :  { %539 = vmatpush3.bf16.msra.mxu1 %v570_v26 }
 0x225   :  { %v247_v19 = vpop.f32.mrb[0].mxu1 }
 0x226   :  { %v248_v20 = vadd.f32 %v481_v18, %v247_v19  ;;  %v526_v21 = vpop.f32.mrb[1].mxu1 }
 0x227   :  { %v250_v22 = vpop.f32.mrb[2].mxu1 }
 0x228   :  { %v253_v23 = vmax.f32 %v248_v20, 0.0  ;;  %v527_v24 = vpop.f32.mrb[3].mxu1 }
 0x22a   :  { %v254_v25 = vpack.c.bf16 %v253_v23, %v253_v23 }
 0x22c   :  { %533 = vmatmul.mubr.msk.bf16.vlgmr.msra.gmra.mrb[4].mxu0 %vm141_vm1, %v254_v25 }
 0x22d   :  { %548 = vmatprep.mubr.msk.bf16.mxu0 %vm746_vm0, %v745_v0  ;;  %545 = vmatpush3.bf16.msra.mxu0 %v571_v27 }
 0x22e   :  { %546 = vmatprep.subr.bf16.mxu0 %v745_v0 }
 0x231   :  { %547 = vmatpush3.bf16.msra.mxu0 %v572_v36 }
 0x2ff   :  { %v315_v29 = vpop.f32.mrb[4].mxu0 }
 0x300   :  { %v316_v30 = vadd.f32 %v485_v28, %v315_v29  ;;  %v534_v31 = vpop.f32.mrb[5].mxu0 }
 0x301   :  { %v318_v32 = vpop.f32.mrb[6].mxu0 }
 0x302   :  { %v321_v33 = vmax.f32 %v316_v30, 0.0  ;;  %v535_v34 = vpop.f32.mrb[7].mxu0 }
 0x304   :  { %v322_v35 = vpack.c.bf16 %v321_v33, %v321_v33 }
 0x306   :  { %541 = vmatmul.mubr.msk.bf16.vlgmr.msra.gmra.mrb[4].mxu1 %vm141_vm1, %v322_v35 }
 0x3d9   :  { %v383_v38 = vpop.f32.mrb[4].mxu1 }
 0x3da   :  { %v384_v39 = vadd.f32 %v489_v37, %v383_v38  ;;  %v542_v40 = vpop.f32.mrb[5].mxu1 }
 0x3db   :  { %v386_v41 = vpop.f32.mrb[6].mxu1 }
 0x3dc   :  { %v389_v42 = vmax.f32 %v384_v39, 0.0  ;;  %v543_v43 = vpop.f32.mrb[7].mxu1 }
 0x3de   :  { %v390_v44 = vpack.c.bf16 %v389_v42, %v389_v42 }
 0x3e0   :  { %549 = vmatmul.mubr.msk.bf16.vlgmr.msra.gmra.mrb[8].mxu0 %vm141_vm1, %v390_v44 }
 0x4b3   :  { %v451_v46 = vpop.f32.mrb[8].mxu0 }
 0x4b4   :  { %v452_v47 = vadd.f32 %v493_v45, %v451_v46  ;;  %v550_v48 = vpop.f32.mrb[9].mxu0 }
 0x4b5   :  { %v454_v49 = vpop.f32.mrb[10].mxu0 }
 0x4b6   :  { %v551_v50 = vpop.f32.mrb[11].mxu0  ;;  %458 = vst.msk [vmem:[#allocation13] sm:$0xff] %vm457_vm2, %v452_v47 }
 0x4b7   :  { %716 = shalt.err (!%p713_p10)
}
 0x4b8   :  { %s717_s10 = scalar_lea.hbm %s943_s11, 128 }
 0x4b9   :  { %p718_p11 = scmp.ne.s32.totalorder %s943_s11, %s717_s10  ;;  %p721_p12 = scmp.lt.u32.totalorder %s717_s10, %s943_s11 }
 0x4bb   :  { %p723_p13 = pnand %p721_p12, %p718_p11 }
 0x4bd   :  { %726 = shalt.err (!%p723_p13)
}
 0x4be   :  { %468 = dma.vmem_to_hbm [thread:$0]  %s466_s1, 128, %s943_s11, [#allocation4]  }
 0x4bf   :  { %735 = dma.done.wait [#allocation4], 128  }
 0x4c0   :  { %736 = vsyncadd [#allocation4], 4294967168 }
 0x4c1   :  { %472 = vsyncpa [#allocation3], 1 }
 0x4c2   :  { %473 = vsyncpa [#allocation6], 1 }
 0x4c3   :  { %474 = vsyncpa [#allocation9], 1 }
 0x4c4   :  { %475 = vsyncpa [#allocation12], 1 }
 0x4c5   :  { %476 = vsyncpa [#allocation4], 1 }

</bundles_post_ra>
